<compile_context>
chip_gen: v5e
topology: v5e:2x2
jax: 0.10.0
libtpu: 0.0.40
codegen_flags: <defaults>
</compile_context>

<pallas_src>
import jax
import jax.numpy as jnp
from jax import lax
from jax.experimental import pallas as pl
from jax.experimental.pallas import tpu as pltpu


def _round_up(x, m):
    return ((x + m - 1) // m) * m


def _valuenet_kernel(obs_ref, w_mpm_ref, b_mpm_ref, w_f_ref, b_f_ref,
                     w_out_row_ref, b_out_ref, out_ref):
    """Fused MLP: (Linear+ReLU) -> (Linear+ReLU) -> Linear(...,1), lane-dense out."""
    # bf16 MXU operands, f32 accumulation; elementwise work stays f32.
    x = obs_ref[...].astype(jnp.bfloat16)                          # [TB, D]

    # main_net (FLAT): final_fc_1 + ReLU
    h0 = jnp.dot(x, w_mpm_ref[...], preferred_element_type=jnp.float32)
    h0 = jnp.maximum(h0 + b_mpm_ref[...], 0.0)                     # [TB, U_mpm] f32

    # value_net[0]: Linear + ReLU
    h1 = jnp.dot(h0.astype(jnp.bfloat16), w_f_ref[...],
                 preferred_element_type=jnp.float32)
    h1 = jnp.maximum(h1 + b_f_ref[...], 0.0)                       # [TB, U_final] f32

    # value_net[2]: Linear(U_final, 1), computed as a lane-dense ROW so the
    # store is unmasked full-vreg instead of a 1-wide masked column.
    #   [1, U_final] x [TB, U_final]^T -> [1, TB]
    v = lax.dot_general(w_out_row_ref[...], h1,
                        (((1,), (1,)), ((), ())),
                        preferred_element_type=jnp.float32)        # [1, TB]
    out_ref[0] = v + b_out_ref[0]                                  # SMEM scalar bias


def value_net_forward(obs, params, *, block_b=1024):
    """Runs the fused ValueNet forward pass with a batch-tiled Pallas kernel."""
    w_mpm, b_mpm, w_f, b_f, w_out, b_out = params
    B, obs_dim = obs.shape
    n_mpm = w_mpm.shape[1]
    n_final = w_f.shape[1]

    # bf16 weights for MXU operands; biases & final-layer row stay f32.
    w_mpm_bf = w_mpm.astype(jnp.bfloat16)
    w_f_bf = w_f.astype(jnp.bfloat16)
    w_out_row = w_out.reshape(1, n_final)                 # [1, U_final] f32
    b_out_s = b_out.reshape(1).astype(jnp.float32)        # SMEM scalar

    # Tile selection: pick the tile COUNT first (>= 2 and even for v7x's two
    # TensorCores once the batch is non-trivial), then size tb to the actual
    # batch, rounded to a multiple of 16 (bf16 packs 2 rows per sublane).
    n_tiles = -(-B // block_b)
    if B > 16:
        n_tiles = _round_up(n_tiles, 2)
    tb = _round_up(-(-B // n_tiles), 16)
    b_pad = n_tiles * tb
    if b_pad != B:
        obs = jnp.pad(obs, ((0, b_pad - B), (0, 0)))

    def resident(shape):
        # Constant index_map => block never changes => stays VMEM-resident.
        return pl.BlockSpec(shape, lambda i: (0,) * len(shape))

    flops = 2 * b_pad * (obs_dim * n_mpm + n_mpm * n_final + n_final)
    bytes_accessed = (b_pad * obs_dim * 4                  # obs in
                      + (w_mpm_bf.size + w_f_bf.size) * 2  # bf16 weights
                      + (b_mpm.size + b_f.size + w_out_row.size + b_out_s.size) * 4
                      + b_pad * 4)                         # output

    out = pl.pallas_call(
        _valuenet_kernel,
        out_shape=jax.ShapeDtypeStruct((n_tiles, 1, tb), jnp.float32),
        grid=(n_tiles,),
        in_specs=[
            pl.BlockSpec((tb, obs_dim), lambda i: (i, 0)),
            resident(w_mpm_bf.shape), resident(b_mpm.shape),
            resident(w_f_bf.shape), resident(b_f.shape),
            resident(w_out_row.shape),
            pl.BlockSpec(memory_space=pltpu.MemorySpace.SMEM),   # b_out scalar
        ],
        out_specs=pl.BlockSpec((1, 1, tb), lambda i: (i, 0, 0)),
        compiler_params=pltpu.CompilerParams(
            dimension_semantics=("parallel",)),
        cost_estimate=pl.CostEstimate(
            flops=flops, transcendentals=0, bytes_accessed=bytes_accessed),
    )(obs, w_mpm_bf, b_mpm, w_f_bf, b_f, w_out_row, b_out_s)

    # (n_tiles, 1, tb) -> (b_pad,) -> (B, 1): row-major matches batch order.
    return out.reshape(b_pad)[:B].reshape(B, 1)


def _linear_params(key, fan_in, fan_out):
    """Deterministic init mimicking torch.nn.Linear default U(-1/sqrt(in), 1/sqrt(in))."""
    kw, kb = jax.random.split(key)
    bound = 1.0 / jnp.sqrt(jnp.float32(fan_in))
    w = jax.random.uniform(kw, (fan_in, fan_out), jnp.float32, -bound, bound)
    b = jax.random.uniform(kb, (1, fan_out), jnp.float32, -bound, bound)
    return w, b


def init_valuenet_params(key, obs_dim, n_mpm_units, n_units_final):
    k0, k1, k2 = jax.random.split(key, 3)
    w_mpm, b_mpm = _linear_params(k0, obs_dim, n_mpm_units)       # main_net.final_fc_1
    w_f, b_f = _linear_params(k1, n_mpm_units, n_units_final)     # value_net[0]
    w_out, b_out = _linear_params(k2, n_units_final, 1)           # value_net[2]
    return (w_mpm, b_mpm, w_f, b_f, w_out, b_out)


def _reference_forward(obs, params):
    """Pure-JAX f32 reference for correctness check."""
    w_mpm, b_mpm, w_f, b_f, w_out, b_out = params
    h0 = jnp.maximum(obs @ w_mpm + b_mpm, 0.0)
    h1 = jnp.maximum(h0 @ w_f + b_f, 0.0)
    return h1 @ w_out + b_out


if __name__ == "__main__":
    # Module-consistent small shapes: obs_dim=32, main-net units=64,
    # n_units_final=64.
    OBS_DIM, N_MPM_UNITS, N_UNITS_FINAL = 32, 64, 64

    key = jax.random.PRNGKey(0)
    k_obs, k_obs2, k_params = jax.random.split(key, 3)
    params = init_valuenet_params(k_params, OBS_DIM, N_MPM_UNITS, N_UNITS_FINAL)

    # (1) tiny batch (padded up to one 16-row tile, single grid step)
    B1 = 2
    obs1 = jax.random.normal(k_obs, (B1, OBS_DIM), jnp.float32)
    out1 = jax.block_until_ready(value_net_forward(obs1, params))
    ref1 = _reference_forward(obs1, params)
    assert out1.shape == (B1, 1), out1.shape
    # bf16 MXU operands => loosened tolerance vs the pure-f32 reference.
    assert jnp.allclose(out1, ref1, atol=2e-2, rtol=2e-2), (out1, ref1)

    # (2) multi-tile batch (exercises even tile count, padding, lane-dense out)
    B2 = 300
    obs2 = jax.random.normal(k_obs2, (B2, OBS_DIM), jnp.float32)
    out2 = jax.block_until_ready(value_net_forward(obs2, params))
    ref2 = _reference_forward(obs2, params)
    assert out2.shape == (B2, 1), out2.shape
    assert jnp.allclose(out2, ref2, atol=2e-2, rtol=2e-2)

    print("KERNEL_OK")
</pallas_src>

<mosaic_0001>
module attributes {stable_mosaic.version = 11 : i64} {
  func.func @_valuenet_kernel(%arg0: i32, %arg1: memref<16x32xf32, #tpu.memory_space<vmem>>, %arg2: memref<32x64xbf16, #tpu.memory_space<vmem>>, %arg3: memref<1x64xf32, #tpu.memory_space<vmem>>, %arg4: memref<64x64xbf16, #tpu.memory_space<vmem>>, %arg5: memref<1x64xf32, #tpu.memory_space<vmem>>, %arg6: memref<1x64xf32, #tpu.memory_space<vmem>>, %arg7: memref<1xf32, #tpu.memory_space<smem>>, %arg8: memref<1x1x16xf32, #tpu.memory_space<vmem>>) attributes {dimension_semantics = [#tpu.dimension_semantics<parallel>], iteration_bounds = array<i64: 1>, scalar_prefetch = 0 : i64, scratch_operands = 0 : i64, tpu.core_type = #tpu.core_type<tc>, window_params = [{transform_indices = @transform_0, window_bounds = array<i64: 16, 32>}, {pipeline_mode = #tpu.pipeline_mode<synchronous>, transform_indices = @transform_1, window_bounds = array<i64: 32, 64>}, {pipeline_mode = #tpu.pipeline_mode<synchronous>, transform_indices = @transform_2, window_bounds = array<i64: 1, 64>}, {pipeline_mode = #tpu.pipeline_mode<synchronous>, transform_indices = @transform_3, window_bounds = array<i64: 64, 64>}, {pipeline_mode = #tpu.pipeline_mode<synchronous>, transform_indices = @transform_4, window_bounds = array<i64: 1, 64>}, {pipeline_mode = #tpu.pipeline_mode<synchronous>, transform_indices = @transform_5, window_bounds = array<i64: 1, 64>}, {transform_indices = @transform_6, window_bounds = array<i64: 1>}, {transform_indices = @transform_7, window_bounds = array<i64: 1, 1, 16>}]} {
    %c0 = arith.constant 0 : index
    %c0_0 = arith.constant 0 : index
    %0 = vector.load %arg1[%c0, %c0_0] : memref<16x32xf32, #tpu.memory_space<vmem>>, vector<16x32xf32>
    %1 = arith.truncf %0 : vector<16x32xf32> to vector<16x32xbf16>
    %c0_1 = arith.constant 0 : index
    %c0_2 = arith.constant 0 : index
    %2 = vector.load %arg2[%c0_1, %c0_2] : memref<32x64xbf16, #tpu.memory_space<vmem>>, vector<32x64xbf16>
    %cst = arith.constant dense<0.000000e+00> : vector<16x64xf32>
    %3 = tpu.matmul %1, %2, %cst {dimension_numbers = #tpu.dot_dimension_numbers<[1], [0], [0], [1], [0, 0, 1, 1], [], []>} : vector<16x32xbf16>, vector<32x64xbf16>, vector<16x64xf32> -> vector<16x64xf32>
    %c0_3 = arith.constant 0 : index
    %c0_4 = arith.constant 0 : index
    %4 = vector.load %arg3[%c0_3, %c0_4] : memref<1x64xf32, #tpu.memory_space<vmem>>, vector<1x64xf32>
    %5 = vector.broadcast %4 : vector<1x64xf32> to vector<16x64xf32>
    %6 = arith.addf %3, %5 : vector<16x64xf32>
    %cst_5 = arith.constant 0.000000e+00 : f32
    %7 = vector.broadcast %cst_5 : f32 to vector<16x64xf32>
    %8 = arith.maximumf %6, %7 : vector<16x64xf32>
    %9 = arith.truncf %8 : vector<16x64xf32> to vector<16x64xbf16>
    %c0_6 = arith.constant 0 : index
    %c0_7 = arith.constant 0 : index
    %10 = vector.load %arg4[%c0_6, %c0_7] : memref<64x64xbf16, #tpu.memory_space<vmem>>, vector<64x64xbf16>
    %cst_8 = arith.constant dense<0.000000e+00> : vector<16x64xf32>
    %11 = tpu.matmul %9, %10, %cst_8 {dimension_numbers = #tpu.dot_dimension_numbers<[1], [0], [0], [1], [0, 0, 1, 1], [], []>} : vector<16x64xbf16>, vector<64x64xbf16>, vector<16x64xf32> -> vector<16x64xf32>
    %c0_9 = arith.constant 0 : index
    %c0_10 = arith.constant 0 : index
    %12 = vector.load %arg5[%c0_9, %c0_10] : memref<1x64xf32, #tpu.memory_space<vmem>>, vector<1x64xf32>
    %13 = vector.broadcast %12 : vector<1x64xf32> to vector<16x64xf32>
    %14 = arith.addf %11, %13 : vector<16x64xf32>
    %cst_11 = arith.constant 0.000000e+00 : f32
    %15 = vector.broadcast %cst_11 : f32 to vector<16x64xf32>
    %16 = arith.maximumf %14, %15 : vector<16x64xf32>
    %c0_12 = arith.constant 0 : index
    %c0_13 = arith.constant 0 : index
    %17 = vector.load %arg6[%c0_12, %c0_13] : memref<1x64xf32, #tpu.memory_space<vmem>>, vector<1x64xf32>
    %cst_14 = arith.constant dense<0.000000e+00> : vector<1x16xf32>
    %18 = tpu.matmul %17, %16, %cst_14 {dimension_numbers = #tpu.dot_dimension_numbers<[1], [1], [0], [0], [0, 0, 1, 0], [], []>} : vector<1x64xf32>, vector<16x64xf32>, vector<1x16xf32> -> vector<1x16xf32>
    %c0_15 = arith.constant 0 : index
    %19 = memref.load %arg7[%c0_15] : memref<1xf32, #tpu.memory_space<smem>>
    %20 = vector.broadcast %19 : f32 to vector<1x16xf32>
    %21 = arith.addf %18, %20 : vector<1x16xf32>
    %c0_16 = arith.constant 0 : index
    %c0_17 = arith.constant 0 : index
    %c0_18 = arith.constant 0 : index
    %22 = vector.load %arg8[%c0_16, %c0_17, %c0_18] : memref<1x1x16xf32, #tpu.memory_space<vmem>>, vector<1x1x16xf32>
    %23 = vector.shape_cast %22 : vector<1x1x16xf32> to vector<1x16xf32>
    %24 = vector.shape_cast %21 : vector<1x16xf32> to vector<1x1x16xf32>
    tpu.vector_store %arg8[%c0_16, %c0_17, %c0_18], %24 {strides = array<i32>} : memref<1x1x16xf32, #tpu.memory_space<vmem>>, vector<1x1x16xf32>,
    return
  }
  func.func @transform_0(%arg0: i32) -> (i32, i32) {
    %c0_i32 = arith.constant 0 : i32
    %c0_i32_0 = arith.constant 0 : i32
    return %arg0, %c0_i32 : i32, i32
  }
  func.func @transform_1(%arg0: i32) -> (i32, i32) {
    %c0_i32 = arith.constant 0 : i32
    %c0_i32_0 = arith.constant 0 : i32
    %c0_i32_1 = arith.constant 0 : i32
    return %c0_i32, %c0_i32_0 : i32, i32
  }
  func.func @transform_2(%arg0: i32) -> (i32, i32) {
    %c0_i32 = arith.constant 0 : i32
    %c0_i32_0 = arith.constant 0 : i32
    %c0_i32_1 = arith.constant 0 : i32
    return %c0_i32, %c0_i32_0 : i32, i32
  }
  func.func @transform_3(%arg0: i32) -> (i32, i32) {
    %c0_i32 = arith.constant 0 : i32
    %c0_i32_0 = arith.constant 0 : i32
    %c0_i32_1 = arith.constant 0 : i32
    return %c0_i32, %c0_i32_0 : i32, i32
  }
  func.func @transform_4(%arg0: i32) -> (i32, i32) {
    %c0_i32 = arith.constant 0 : i32
    %c0_i32_0 = arith.constant 0 : i32
    %c0_i32_1 = arith.constant 0 : i32
    return %c0_i32, %c0_i32_0 : i32, i32
  }
  func.func @transform_5(%arg0: i32) -> (i32, i32) {
    %c0_i32 = arith.constant 0 : i32
    %c0_i32_0 = arith.constant 0 : i32
    %c0_i32_1 = arith.constant 0 : i32
    return %c0_i32, %c0_i32_0 : i32, i32
  }
  func.func @transform_6(%arg0: i32) -> i32 {
    %c0_i32 = arith.constant 0 : i32
    %c0_i32_0 = arith.constant 0 : i32
    return %c0_i32 : i32
  }
  func.func @transform_7(%arg0: i32) -> (i32, i32, i32) {
    %c0_i32 = arith.constant 0 : i32
    %c0_i32_0 = arith.constant 0 : i32
    %c0_i32_1 = arith.constant 0 : i32
    return %arg0, %c0_i32, %c0_i32_0 : i32, i32, i32
  }
}

</mosaic_0001>

<bundles_post_ra>
// kernel: tpu_custom_call.1
= control target key start
LH: loop header
LB: loop body
LE: loop exit
PB: predicated region body
PF: predicated region fallthrough
CT: control target
= control target key end

     0   :  { %13 = vsyncpa [#allocation4], 0  ;;  %s447_s0 = inlined_call_operand.hbm [shape: f32[16,32], index: 0, kind: input, shape index: {}]   ;;  %s448_s1 = inlined_call_operand.hbm [shape: bf16[32,64], index: 1, kind: input, shape index: {}]   ;;  %s449_s2 = inlined_call_operand.vmem [shape: f32[1,64], index: 2, kind: input, shape index: {}]   ;;  %s450_s3 = inlined_call_operand.hbm [shape: bf16[64,64], index: 3, kind: input, shape index: {}]   ;;  %s451_s4 = inlined_call_operand.vmem [shape: f32[1,64], index: 4, kind: input, shape index: {}]   ;;  %s452_s5 = inlined_call_operand.vmem [shape: f32[1,64], index: 5, kind: input, shape index: {}]   ;;  %s453_s6 = inlined_call_operand.<no memory space> [shape: f32[1], index: 6, kind: input, shape index: {}]   ;;  %s454_s7 = inlined_call_operand.hbm [shape: f32[1,1,16], index: 7, kind: output, shape index: {}]  }
   0x1   :  { %14 = vsyncpa [#allocation7], 0  ;;  %s33_s26 = sshll.u32 %s448_s1, 4  ;;  %s34_s26 = int_to_ptr.hbm [resolvable:$true] %s33_s26 }
   0x2   :  { %15 = vsyncpa [#allocation5], 0  ;;  %s375_s27 = smov [#allocation6]   ;;  %s20_s8 = sshll.u32 %s447_s0, 4  ;;  %s21_s8 = int_to_ptr.hbm [resolvable:$true] %s20_s8 }
   0x3   :  { %s35_s28 = sshll.u32 %s375_s27, 4  ;;  %s376_s9 = smov 64   ;;  %s36_s28 = int_to_ptr.vmem [resolvable:$true] %s35_s28 }
   0x4   :  { %s377_s10 = smov 4   ;;  %s378_s11 = smov [#allocation3]  }
   0x5   :  { %41 = dma.hbm_to_vmem [thread:$0]  %s34_s26, 256, %s36_s28, [#allocation7], %s376_s9, %s376_s9, %s377_s10  }
   0x6   :  { %s22_s12 = sshll.u32 %s378_s11, 4  ;;  %s379_s13 = smov 128   ;;  %s23_s12 = int_to_ptr.vmem [resolvable:$true] %s22_s12 }
   0x7   :  { %s380_s14 = smov 8   ;;  %s48_s16 = sshll.u32 %s450_s3, 4  ;;  %s49_s16 = int_to_ptr.hbm [resolvable:$true] %s48_s16 }
   0x8   :  { %28 = dma.hbm_to_vmem [thread:$0]  %s21_s8, 256, %s23_s12, [#allocation4], %s379_s13, %s379_s13, %s380_s14  }
   0x9   :  { %s381_s17 = smov [#allocation8]  }
   0xa   :  { %s50_s18 = sshll.u32 %s381_s17, 4  ;;  %s51_s18 = int_to_ptr.vmem [resolvable:$true] %s50_s18 }
   0xb   :  { %56 = dma.hbm_to_vmem [thread:$0]  %s49_s16, 512, %s51_s18, [#allocation7], %s376_s9, %s376_s9, %s377_s10  }
   0xc   :  { %369 = dma.done.wait [#allocation4], 256  }
   0xd   :  { %370 = vsyncadd [#allocation4], 4294967040 }
   0xe   :  { %371 = dma.done.wait [#allocation7], 768  }
   0xf   :  { %372 = vsyncadd [#allocation7], 4294966528  ;;  %v258_v0 = vld [vmem:[#allocation6 + $0x8] sm:$0xff]  ;;  %v257_v1 = vld [vmem:[#allocation6] sm:$0xff]  ;;  %vm99_vm0 = vcmask 261120   ;;  %vm156_vm1 = vcmask 523264   ;;  %v178_v25 = vstv %s453_s6 }
  0x10   :  { %109 = vmatpush.bf16.msra.mxu0 %v258_v0  ;;  %v76_v2 = vld [vmem:[#allocation3] sm:$0xff]  ;;  %v77_v3 = vld [vmem:[#allocation3 + $0x8] sm:$0xff]  ;;  %v262_v5 = vld [vmem:[#allocation8 + $0x18] sm:$0xff]  ;;  %s382_s24 = smov [#allocation9]   ;;  %s217_s27 = sshll.u32 %s454_s7, 4  ;;  %vm208_vm2 = vcmask 122880   ;;  %s218_s27 = int_to_ptr.hbm [resolvable:$true] %s217_s27 }
  0x11   :  { %v78_v4 = vpack.c.bf16 %v77_v3, %v76_v2  ;;  %164 = vmatpush.bf16.msra.mxu1 %v262_v5  ;;  %v261_v6 = vld [vmem:[#allocation8 + $0x10] sm:$0xff]  ;;  %v260_v7 = vld [vmem:[#allocation8 + $0x8] sm:$0xff]  ;;  %v259_v8 = vld [vmem:[#allocation8] sm:$0xff]  ;;  %s215_s25 = sshll.u32 %s382_s24, 4  ;;  %s216_s25 = int_to_ptr.vmem [resolvable:$true] %s215_s25 }
  0x12   :  { %v271_v10 = vld [vmem:[%s449_s2] ss:$0 sm:$0xff] }
  0x13   :  { %v272_v18 = vld [vmem:[%s451_s4] ss:$0 sm:$0xff] }
  0x14   :  { %110 = vmatpush.bf16.msra.mxu0 %v257_v1  ;;  %v176_v24 = vld [vmem:[%s452_s5] sm:$0x1] }
  0x15   :  { %165 = vmatpush.bf16.msra.mxu1 %v261_v6 }
  0x17   :  { %236 = vmatmul.msk.bf16.vlgmr.msra.gmra.mxu0 %vm99_vm0, %v78_v4 }
  0x19   :  { %166 = vmatpush.bf16.msra.mxu1 %v260_v7 }
  0x1d   :  { %167 = vmatpush.bf16.msra.mxu1 %v259_v8 }
  0x94   :  { %v112_v9 = vpop.f32.mrf.mxu0 }
  0x95   :  { %v113_v11 = vadd.f32 %v271_v10, %v112_v9 }
  0x97   :  { %v117_v14 = vmax.f32 %v113_v11, 0.0 }
  0x9c   :  { %v114_v12 = vpop.f32.mrf.mxu0 }
  0x9d   :  { %v115_v13 = vadd.f32 %v271_v10, %v114_v12 }
  0x9f   :  { %v118_v15 = vmax.f32 %v115_v13, 0.0 }
  0xa1   :  { %v119_v16 = vpack.c.bf16 %v118_v15, %v117_v14 }
  0xa3   :  { %253 = vmatmul.msk.bf16.vlgmr.msra.gmra.mxu1 %vm156_vm1, %v119_v16 }
 0x120   :  { %v169_v17 = vpop.f32.mrf.mxu1 }
 0x121   :  { %v170_v21 = vadd.f32 %v272_v18, %v169_v17 }
 0x123   :  { %v174_v23 = vmax.f32 %v170_v21, 0.0 }
 0x128   :  { %v171_v19 = vpop.f32.mrf.mxu1 }
 0x129   :  { %v172_v20 = vadd.f32 %v272_v18, %v171_v19 }
 0x12b   :  { %v175_v22 = vmax.f32 %v172_v20, 0.0 }
 0x12d   :  { %254 = vmatpush.xpose.msk.msra.mxu2 %vm156_vm1, %v175_v22 }
 0x131   :  { %255 = vmatpush.xpose.msk.msra.mxu2 %vm156_vm1, %v174_v23 }
 0x134   :  { %256 = vmatmul.msk.f32.vlgmr.msra.gmra.mxu2 %vm156_vm1, %v176_v24 }
 0x1b7   :  { %v205_v26 = vpop.f32.mrf.mxu2 }
 0x1b8   :  { %v206_v27 = vadd.f32 %v205_v26, %v178_v25 }
 0x1ba   :  { %209 = vst.msk [vmem:[#allocation9] sm:$0x1] %vm208_vm2, %v206_v27 }
 0x1bb   :  { %220 = dma.vmem_to_hbm [thread:$0]  %s216_s25, 16, %s218_s27, [#allocation5]  }
 0x1bc   :  { %373 = dma.done.wait [#allocation5], 16  }
 0x1bd   :  { %374 = vsyncadd [#allocation5], 4294967280 }
 0x1be   :  { %225 = vsyncpa [#allocation4], 1 }
 0x1bf   :  { %226 = vsyncpa [#allocation7], 1 }
 0x1c0   :  { %227 = vsyncpa [#allocation5], 1 }

</bundles_post_ra>
